<compile_context>
chip_gen: v7x
topology: tpu7x:2x2x1
jax: 0.10.0
libtpu: 0.0.40
codegen_flags: <defaults>
</compile_context>

<pallas_src>
import jax
import jax.numpy as jnp
from jax.experimental import pallas as pl
from jax.experimental.pallas import tpu as pltpu


def _round_up(x, m):
    return (x + m - 1) // m * m


def _pick_tiles(n):
    """Pick (TM, TK, Np) row/reduction tiles for the adj aggregation.

    Small graphs run as a single full block; large graphs use 256x512 bf16 adj
    tiles (~256 KiB/buffer) which fit comfortably in v5e's 16 MiB scoped VMEM and
    v7x's 64 MiB physical VMEM with double buffering.
    """
    if n <= 512:
        npad = _round_up(n, 8)
        return npad, npad, npad
    tm, tk = 256, 512
    return tm, tk, _round_up(n, 512)


# ---------------------------------------------------------------------------
# Kernel 1: support1 = bf16(x) @ bf16(W1)   (dense feature projection)
# ---------------------------------------------------------------------------
def linear_kernel(x_ref, w_ref, o_ref):
    o_ref[...] = jnp.dot(
        x_ref[...].astype(jnp.bfloat16), w_ref[...],
        preferred_element_type=jnp.float32,
    ).astype(o_ref.dtype)


# ---------------------------------------------------------------------------
# Kernel 2: layer-1 aggregation fused with layer-2 projection
#   acc  += adj[i,k] @ support1[k]                (f32 accumulator, k-loop)
#   h     = relu(acc + b1)                        (finalize, f32)
#   out_i = bf16(h) @ bf16(W2)                    (finalize -> support2 tile)
# ---------------------------------------------------------------------------
def agg_relu_project_kernel(adj_ref, s_ref, b_ref, w2_ref, o_ref, acc_ref):
    k = pl.program_id(1)

    @pl.when(k == 0)
    def _():
        acc_ref[...] = jnp.zeros_like(acc_ref)

    acc_ref[...] += jnp.dot(adj_ref[...], s_ref[...],
                            preferred_element_type=jnp.float32)

    @pl.when(k == pl.num_programs(1) - 1)
    def _():
        h = jnp.maximum(acc_ref[...] + b_ref[...], 0.0)
        # TODO(synk): training-mode dropout (stochastic mask via pltpu.prng_random_bits)
        # is not emitted; eval-mode dropout is the identity.
        o_ref[...] = jnp.dot(h.astype(jnp.bfloat16), w2_ref[...],
                             preferred_element_type=jnp.float32).astype(o_ref.dtype)


# ---------------------------------------------------------------------------
# Kernel 3: layer-2 aggregation + bias + masked log-softmax over real classes
# ---------------------------------------------------------------------------
def make_agg_logsoftmax_kernel(nclass):
    def kernel(adj_ref, s_ref, b_ref, o_ref, acc_ref):
        k = pl.program_id(1)

        @pl.when(k == 0)
        def _():
            acc_ref[...] = jnp.zeros_like(acc_ref)

        acc_ref[...] += jnp.dot(adj_ref[...], s_ref[...],
                                preferred_element_type=jnp.float32)

        @pl.when(k == pl.num_programs(1) - 1)
        def _():
            logits = acc_ref[...] + b_ref[...]
            col = jax.lax.broadcasted_iota(jnp.int32, logits.shape, 1)
            valid = col < nclass
            masked = jnp.where(valid, logits, -1e30)
            m = jnp.max(masked, axis=-1, keepdims=True)
            z = logits - m
            e = jnp.where(valid, jnp.exp(z), 0.0)
            lse = jnp.log(jnp.sum(e, axis=-1, keepdims=True))
            o_ref[...] = (z - lse).astype(o_ref.dtype)

    return kernel


# ---------------------------------------------------------------------------
# Wrapper
# ---------------------------------------------------------------------------
def gcn_forward(x, adj, w1, b1, w2, b2):
    N, F = x.shape
    nhid = w1.shape[1]
    nclass = w2.shape[1]

    Hp = _round_up(nhid, 128)     # lane-dense hidden width
    Cp = _round_up(nclass, 128)   # lane-dense class width
    TM, TK, Np = _pick_tiles(N)

    # Layout plumbing in the wrapper: pad to lane-dense widths, cast the big
    # reused operands (adj, weights) to bf16 once.
    bf = jnp.bfloat16
    adj_p = jnp.pad(adj.astype(bf), ((0, Np - N), (0, Np - N)))
    x_p = jnp.pad(x.astype(jnp.float32), ((0, Np - N), (0, 0)))
    w1_p = jnp.pad(w1.astype(bf), ((0, 0), (0, Hp - nhid)))
    b1_p = jnp.pad(b1.reshape(1, -1).astype(jnp.float32), ((0, 0), (0, Hp - nhid)))
    w2_p = jnp.pad(w2.astype(bf), ((0, Hp - nhid), (0, Cp - nclass)))
    b2_p = jnp.pad(b2.reshape(1, -1).astype(jnp.float32), ((0, 0), (0, Cp - nclass)))

    n_row = Np // TM
    n_k = Np // TK

    # ---- call 1: support1 = x @ W1 ----------------------------------------
    support1 = pl.pallas_call(
        linear_kernel,
        out_shape=jax.ShapeDtypeStruct((Np, Hp), bf),
        grid_spec=pltpu.PrefetchScalarGridSpec(
            num_scalar_prefetch=0,
            grid=(n_row,),
            in_specs=[
                pl.BlockSpec((TM, F), lambda i: (i, 0)),
                pl.BlockSpec((F, Hp), lambda i: (0, 0)),
            ],
            out_specs=pl.BlockSpec((TM, Hp), lambda i: (i, 0)),
        ),
        compiler_params=pltpu.CompilerParams(dimension_semantics=("parallel",)),
        cost_estimate=pl.CostEstimate(
            flops=2 * Np * F * Hp,
            transcendentals=0,
            bytes_accessed=Np * F * 4 + F * Hp * 2 + Np * Hp * 2,
        ),
    )(x_p, w1_p)

    # ---- call 2: support2 = bf16(relu(adj @ support1 + b1)) @ W2 ----------
    support2 = pl.pallas_call(
        agg_relu_project_kernel,
        out_shape=jax.ShapeDtypeStruct((Np, Cp), bf),
        grid_spec=pltpu.PrefetchScalarGridSpec(
            num_scalar_prefetch=0,
            grid=(n_row, n_k),
            in_specs=[
                pl.BlockSpec((TM, TK), lambda i, k: (i, k)),   # adj tile
                pl.BlockSpec((TK, Hp), lambda i, k: (k, 0)),   # support1 tile
                pl.BlockSpec((1, Hp), lambda i, k: (0, 0)),    # b1 (finalize only)
                pl.BlockSpec((Hp, Cp), lambda i, k: (0, 0)),   # W2 (finalize only)
            ],
            out_specs=pl.BlockSpec((TM, Cp), lambda i, k: (i, 0)),
            scratch_shapes=[pltpu.VMEM((TM, Hp), jnp.float32)],
        ),
        compiler_params=pltpu.CompilerParams(
            dimension_semantics=("parallel", "arbitrary")),
        cost_estimate=pl.CostEstimate(
            flops=2 * Np * Np * Hp + 2 * Np * Hp * Cp,
            transcendentals=0,
            bytes_accessed=Np * Np * 2 + Np * Hp * 2 + Hp * 4
            + Hp * Cp * 2 + Np * Cp * 2,
        ),
    )(adj_p, support1, b1_p, w2_p)

    # ---- call 3: out = log_softmax(adj @ support2 + b2) --------------------
    out_padded = pl.pallas_call(
        make_agg_logsoftmax_kernel(nclass),
        out_shape=jax.ShapeDtypeStruct((Np, Cp), jnp.float32),
        grid_spec=pltpu.PrefetchScalarGridSpec(
            num_scalar_prefetch=0,
            grid=(n_row, n_k),
            in_specs=[
                pl.BlockSpec((TM, TK), lambda i, k: (i, k)),   # adj tile
                pl.BlockSpec((TK, Cp), lambda i, k: (k, 0)),   # support2 tile
                pl.BlockSpec((1, Cp), lambda i, k: (0, 0)),    # b2 (finalize only)
            ],
            out_specs=pl.BlockSpec((TM, Cp), lambda i, k: (i, 0)),
            scratch_shapes=[pltpu.VMEM((TM, Cp), jnp.float32)],
        ),
        compiler_params=pltpu.CompilerParams(
            dimension_semantics=("parallel", "arbitrary")),
        cost_estimate=pl.CostEstimate(
            flops=2 * Np * Np * Cp,
            transcendentals=Np * Cp + Np,
            bytes_accessed=Np * Np * 2 + Np * Cp * 2 + Cp * 4 + Np * Cp * 4,
        ),
    )(adj_p, support2, b2_p)

    return out_padded[:N, :nclass]


# ---------------------------------------------------------------------------
# Parameter init matching GraphConvolution.reset_parameters():
# uniform(-stdv, stdv) with stdv = 1/sqrt(out_features)
# ---------------------------------------------------------------------------
def init_gcn_params(key, nfeat, nhid, nclass):
    k1, k2, k3, k4 = jax.random.split(key, 4)
    stdv1 = 1.0 / jnp.sqrt(jnp.float32(nhid))
    stdv2 = 1.0 / jnp.sqrt(jnp.float32(nclass))
    w1 = jax.random.uniform(k1, (nfeat, nhid), jnp.float32, -stdv1, stdv1)
    b1 = jax.random.uniform(k2, (1, nhid), jnp.float32, -stdv1, stdv1)
    w2 = jax.random.uniform(k3, (nhid, nclass), jnp.float32, -stdv2, stdv2)
    b2 = jax.random.uniform(k4, (1, nclass), jnp.float32, -stdv2, stdv2)
    return w1, b1, w2, b2


def reference_bf16(x, adj, w1, b1, w2, b2):
    """Pure-JAX reference mirroring the kernel's bf16 operand / f32 accumulation."""
    bf = jnp.bfloat16
    adj_b = adj.astype(bf)
    s1 = jnp.dot(x.astype(bf), w1.astype(bf), preferred_element_type=jnp.float32)
    h = jnp.maximum(
        jnp.dot(adj_b, s1.astype(bf), preferred_element_type=jnp.float32) + b1, 0.0)
    s2 = jnp.dot(h.astype(bf), w2.astype(bf), preferred_element_type=jnp.float32)
    logits = jnp.dot(adj_b, s2.astype(bf), preferred_element_type=jnp.float32) + b2
    return jax.nn.log_softmax(logits, axis=1)


def reference_f32(x, adj, w1, b1, w2, b2):
    h = jnp.maximum(adj @ (x @ w1) + b1, 0.0)
    logits = adj @ (h @ w2) + b2
    return jax.nn.log_softmax(logits, axis=1)


if __name__ == "__main__":
    key = jax.random.PRNGKey(0)
    kx, kadj, kp = jax.random.split(key, 3)

    N, nfeat, nhid, nclass = 64, 32, 16, 8

    # node features
    x = jax.random.normal(kx, (N, nfeat), jnp.float32)

    # symmetric, row-normalized dense adjacency with self-loops
    a = (jax.random.uniform(kadj, (N, N)) < 0.1).astype(jnp.float32)
    a = jnp.maximum(a, a.T) + jnp.eye(N, dtype=jnp.float32)
    adj = a / jnp.sum(a, axis=1, keepdims=True)

    w1, b1, w2, b2 = init_gcn_params(kp, nfeat, nhid, nclass)

    out = jax.block_until_ready(gcn_forward(x, adj, w1, b1, w2, b2))

    ref_mirror = reference_bf16(x, adj, w1, b1, w2, b2)
    ref_full = reference_f32(x, adj, w1, b1, w2, b2)

    assert out.shape == (N, nclass)
    assert jnp.max(jnp.abs(out - ref_mirror)) < 1e-3, "mismatch vs bf16-mirrored reference"
    assert jnp.max(jnp.abs(out - ref_full)) < 1e-1, "mismatch vs f32 reference"

    print("KERNEL_OK")
</pallas_src>

<mosaic_0001>
module attributes {stable_mosaic.version = 11 : i64} {
  func.func @linear_kernel(%arg0: i32, %arg1: memref<64x32xf32, #tpu.memory_space<vmem>>, %arg2: memref<32x128xbf16, #tpu.memory_space<vmem>>, %arg3: memref<64x128xbf16, #tpu.memory_space<vmem>>) attributes {dimension_semantics = [#tpu.dimension_semantics<parallel>], iteration_bounds = array<i64: 1>, scalar_prefetch = 0 : i64, scratch_operands = 0 : i64, tpu.core_type = #tpu.core_type<tc>, window_params = [{transform_indices = @transform_0, window_bounds = array<i64: 64, 32>}, {pipeline_mode = #tpu.pipeline_mode<synchronous>, transform_indices = @transform_1, window_bounds = array<i64: 32, 128>}, {transform_indices = @transform_2, window_bounds = array<i64: 64, 128>}]} {
    %c0 = arith.constant 0 : index
    %c0_0 = arith.constant 0 : index
    %0 = vector.load %arg1[%c0, %c0_0] : memref<64x32xf32, #tpu.memory_space<vmem>>, vector<64x32xf32>
    %1 = arith.truncf %0 : vector<64x32xf32> to vector<64x32xbf16>
    %c0_1 = arith.constant 0 : index
    %c0_2 = arith.constant 0 : index
    %2 = vector.load %arg2[%c0_1, %c0_2] : memref<32x128xbf16, #tpu.memory_space<vmem>>, vector<32x128xbf16>
    %cst = arith.constant dense<0.000000e+00> : vector<64x128xf32>
    %3 = tpu.matmul %1, %2, %cst {dimension_numbers = #tpu.dot_dimension_numbers<[1], [0], [0], [1], [0, 0, 1, 1], [], []>} : vector<64x32xbf16>, vector<32x128xbf16>, vector<64x128xf32> -> vector<64x128xf32>
    %4 = arith.truncf %3 : vector<64x128xf32> to vector<64x128xbf16>
    %c0_3 = arith.constant 0 : index
    %c0_4 = arith.constant 0 : index
    %5 = vector.load %arg3[%c0_3, %c0_4] : memref<64x128xbf16, #tpu.memory_space<vmem>>, vector<64x128xbf16>
    tpu.vector_store %arg3[%c0_3, %c0_4], %4 {strides = array<i32>} : memref<64x128xbf16, #tpu.memory_space<vmem>>, vector<64x128xbf16>,
    return
  }
  func.func @transform_0(%arg0: i32) -> (i32, i32) {
    %c0_i32 = arith.constant 0 : i32
    %c0_i32_0 = arith.constant 0 : i32
    return %arg0, %c0_i32 : i32, i32
  }
  func.func @transform_1(%arg0: i32) -> (i32, i32) {
    %c0_i32 = arith.constant 0 : i32
    %c0_i32_0 = arith.constant 0 : i32
    %c0_i32_1 = arith.constant 0 : i32
    return %c0_i32, %c0_i32_0 : i32, i32
  }
  func.func @transform_2(%arg0: i32) -> (i32, i32) {
    %c0_i32 = arith.constant 0 : i32
    %c0_i32_0 = arith.constant 0 : i32
    return %arg0, %c0_i32 : i32, i32
  }
}

</mosaic_0001>

<bundles_post_ra>
// kernel: tpu_custom_call.1
= control target key start
LH: loop header
LB: loop body
LE: loop exit
PB: predicated region body
PF: predicated region fallthrough
CT: control target
= control target key end

     0   :  { %vm41_vm0 = vcmask 261120   ;;  %s335_s0 = inlined_call_operand.vmem [shape: f32[64,32], index: 0, kind: input, shape index: {}]   ;;  %s336_s1 = inlined_call_operand.vmem [shape: bf16[32,128], index: 1, kind: input, shape index: {}]   ;;  %s337_s2 = inlined_call_operand.hbm [shape: bf16[64,128], index: 2, kind: output, shape index: {}]  }
   0x1   :  { %v245_v0 = vld [vmem:[%s336_s1] sm:$0xff]   ;;  %v246_v1 = vld [vmem:[%s336_s1 + $0x8] sm:$0xff]   ;;  %v15_v7 = vld [vmem:[%s335_s0 + $0x10] sm:$0xff] }
   0x2   :  { %226 = vmatprep.subr.bf16.mxu0 %v245_v0  ;;  %238 = vmatprep.subr.bf16.mxu1 %v245_v0  ;;  %v13_v2 = vld [vmem:[%s335_s0] sm:$0xff]  ;;  %v14_v3 = vld [vmem:[%s335_s0 + $0x8] sm:$0xff]  ;;  %v16_v8 = vld [vmem:[%s335_s0 + $0x18] sm:$0xff] }
   0x3   :  { %v17_v4 = vld [vmem:[%s335_s0 + $0x20] sm:$0xff]  ;;  %227 = vmatpush3.bf16.msra.mxu0 %v245_v0  ;;  %240 = vmatpush3.bf16.msra.mxu1 %v245_v0  ;;  %v21_v5 = vpack.c.bf16 %v14_v3, %v13_v2  ;;  %v18_v6 = vld [vmem:[%s335_s0 + $0x28] sm:$0xff]  ;;  %v19_v10 = vld [vmem:[%s335_s0 + $0x30] sm:$0xff] }
   0x4   :  { %228 = vmatprep.subr.bf16.mxu0 %v246_v1  ;;  %239 = vmatprep.subr.bf16.mxu1 %v246_v1  ;;  %v23_v9 = vpack.c.bf16 %v18_v6, %v17_v4  ;;  %v20_v11 = vld [vmem:[%s335_s0 + $0x38] sm:$0xff] }
   0x5   :  { %7 = vsyncpa [#allocation3], 0  ;;  %230 = vmatprep.mubr.msk.bf16.mxu0 %vm41_vm0, %v21_v5  ;;  %v22_v12 = vpack.c.bf16 %v16_v8, %v15_v7  ;;  %v24_v13 = vpack.c.bf16 %v20_v11, %v19_v10  ;;  %s271_s28 = smov [#allocation2]  }
   0x6   :  { %234 = vmatprep.mubr.msk.bf16.mxu1 %vm41_vm0, %v23_v9  ;;  %s164_s29 = sshll.u32 %s271_s28, 4  ;;  %s165_s29 = int_to_ptr.vmem [resolvable:$true] %s164_s29 }
   0x7   :  { %229 = vmatpush3.bf16.msra.mxu0 %v246_v1  ;;  %241 = vmatpush3.bf16.msra.mxu1 %v246_v1  ;;  %s247_s0 = scalar_lea.vmem %s165_s29, 512  ;;  %p252_p1 = scmp.lt.s32.totalorder %s165_s29, %s165_s29 }
   0x8   :  { %p248_p0 = scmp.ne.s32.totalorder %s165_s29, %s247_s0  ;;  %p253_p2 = scmp.lt.s32.totalorder %s247_s0, %s247_s0 }
   0xa   :  { %231 = vmatmul.mubr.msk.bf16.vlgmr.msra.gmra.mrb[0].mxu0 %vm41_vm0, %v22_v12  ;;  %235 = vmatmul.mubr.msk.bf16.vlgmr.msra.gmra.mrb[0].mxu1 %vm41_vm0, %v24_v13  ;;  %p254_p3 = por %p253_p2, %p252_p1 }
   0xc   :  { %p255_p4 = pnand %p254_p3, %p248_p0 }
  0xdd   :  { %v232_v14 = vpop.f32.mrb[0].mxu0  ;;  %v236_v15 = vpop.f32.mrb[0].mxu1 }
  0xde   :  { %v88_v16 = vpop.f32.mrb[1].mxu0  ;;  %v104_v17 = vpop.f32.mrb[1].mxu1 }
  0xdf   :  { %v233_v18 = vpop.f32.mrb[2].mxu0  ;;  %v237_v19 = vpop.f32.mrb[2].mxu1 }
  0xe0   :  { %v205_v20 = vpack.c.bf16 %v233_v18, %v232_v14  ;;  %v215_v21 = vpack.c.bf16 %v237_v19, %v236_v15  ;;  %v91_v22 = vpop.f32.mrb[3].mxu0  ;;  %v107_v23 = vpop.f32.mrb[3].mxu1 }
  0xe1   :  { %v200_v24 = vpack.c.bf16 %v91_v22, %v88_v16  ;;  %v210_v25 = vpack.c.bf16 %v107_v23, %v104_v17 }
  0xe2   :  { %217 = vst [vmem:[#allocation2 + $0x8] sm:$0xff] %v205_v20   ;;  %219 = vst [vmem:[#allocation2 + $0x18] sm:$0xff] %v215_v21  }
  0xe3   :  { %201 = vst [vmem:[#allocation2] sm:$0xff] %v200_v24   ;;  %218 = vst [vmem:[#allocation2 + $0x10] sm:$0xff] %v210_v25  }
  0xe4   :  { %258 = shalt.err (!%p255_p4)
}
  0xe5   :  { %s259_s4 = scalar_lea.hbm %s337_s2, 512 }
  0xe6   :  { %p260_p5 = scmp.ne.s32.totalorder %s337_s2, %s259_s4  ;;  %p263_p6 = scmp.lt.u32.totalorder %s259_s4, %s337_s2 }
  0xe8   :  { %p265_p7 = pnand %p263_p6, %p260_p5 }
  0xea   :  { %268 = shalt.err (!%p265_p7)
}
  0xeb   :  { %s272_s9 = smov 64   ;;  %s273_s10 = smov 4  }
  0xec   :  { %170 = dma.vmem_to_hbm [thread:$0]  %s165_s29, 512, %s337_s2, [#allocation3], %s272_s9, %s272_s9, %s273_s10  }
  0xed   :  { %269 = dma.done.wait [#allocation3], 512  }
  0xee   :  { %270 = vsyncadd [#allocation3], 4294966784 }
  0xef   :  { %174 = vsyncpa [#allocation3], 1 }

</bundles_post_ra>
